<compile_context>
chip_gen: v7x
topology: tpu7x:2x2x1
jax: 0.10.0
libtpu: 0.0.40
codegen_flags: <defaults>
</compile_context>

<pallas_src>
import functools

import jax
import jax.numpy as jnp
from jax.experimental import pallas as pl
from jax.experimental.pallas import tpu as pltpu


def _round_up(v, m):
    return ((v + m - 1) // m) * m


# ----------------------------------------------------------------------------
# Fused GATv2 kernel: relation select + logits + online softmax + aggregation
# ----------------------------------------------------------------------------
def _fused_gatv2_kernel(xl_src_ref, xl_dst_ref, xr_ref, mself_ref, reltab_ref,
                        att_ref, rid_ref, bias_ref, o_ref,
                        m_sc, l_sc, acc_sc, *, H, Cp, R, NEG):
    j = pl.program_id(1)
    nj = pl.num_programs(1)
    bf16 = jnp.bfloat16

    @pl.when(j == 0)
    def _():
        m_sc[...] = jnp.full(m_sc.shape, NEG, jnp.float32)
        l_sc[...] = jnp.zeros(l_sc.shape, jnp.float32)
        acc_sc[...] = jnp.zeros(acc_sc.shape, jnp.float32)

    rid = rid_ref[...]                          # [TI, TS] int32: -1 no edge, 0..R-1 rel, R self-loop
    mask = rid >= 0
    is_self = rid == R
    mask_f = mask.astype(jnp.float32)

    xl_s = xl_src_ref[...]                      # [TS, H*Cp]  W_l x_j + b_l  (source chunk)
    xl_d = xl_dst_ref[...]                      # [TI, H*Cp]  W_l x_i + b_l  (target tile)
    xr_d = xr_ref[...]                          # [TI, H*Cp]  W_r x_i + b_r
    m_self = mself_ref[...]                     # [TI, H*Cp]  W_e . (mean incoming edge_attr of i)
    rel_tab = reltab_ref[...]                   # [R,  H*Cp]  W_e . relation bank (projected once)
    att = att_ref[...]                          # [1,  H*Cp]

    for h in range(H):                          # static, small head loop
        lo, hi = h * Cp, (h + 1) * Cp
        u = xl_s[:, lo:hi]                      # [TS, Cp]  message source
        u_d = xl_d[:, lo:hi]                    # [TI, Cp]
        v = xr_d[:, lo:hi]                      # [TI, Cp]
        a = att[:, lo:hi]                       # [1,  Cp]
        msf = m_self[:, lo:hi]                  # [TI, Cp]

        # Per-(i,j) relation embedding built ONCE (select-accumulate over the tiny table).
        rel_vec = jnp.zeros(rid.shape + (Cp,), jnp.float32)           # [TI, TS, Cp]
        for r in range(R):
            onehot_r = (rid == r).astype(jnp.float32)[:, :, None]     # [TI, TS, 1]
            rel_vec = rel_vec + onehot_r * rel_tab[r:r + 1, lo:hi][None, :, :]

        # GATv2 logits, computed a single time per head/tile.
        s = u[None, :, :] + v[:, None, :] + rel_vec                   # [TI, TS, Cp]
        s = jnp.where(s > 0.0, s, 0.2 * s)                            # LeakyReLU(0.2)
        e = jnp.sum(s * a[None, :, :], axis=-1)                       # [TI, TS]
        # TODO(synk): move this lane reduce to an MXU [TI*TS,Cp]@[Cp,1] contraction once the
        # [TI*TS,1]->[TI,TS] relayout is verified to lower cleanly on all targets.

        # Self-loop logit (edge_attr = mean of incoming) depends only on the target row.
        s_d = u_d + v + msf
        s_d = jnp.where(s_d > 0.0, s_d, 0.2 * s_d)
        e_d = jnp.sum(s_d * a, axis=-1, keepdims=True)                # [TI, 1]
        e = jnp.where(is_self, e_d, e)
        e = jnp.where(mask, e, NEG)

        # Online softmax across source chunks (running max / denom / accumulator in scratch).
        m_prev = m_sc[:, h:h + 1]
        m_new = jnp.maximum(m_prev, jnp.max(e, axis=-1, keepdims=True))
        scale = jnp.exp(m_prev - m_new)
        p = jnp.exp(e - m_new) * mask_f                               # [TI, TS]
        l_sc[:, h:h + 1] = scale * l_sc[:, h:h + 1] + jnp.sum(p, axis=-1, keepdims=True)
        acc_sc[:, lo:hi] = scale * acc_sc[:, lo:hi] + jnp.dot(
            p.astype(bf16), u.astype(bf16), preferred_element_type=jnp.float32)
        m_sc[:, h:h + 1] = m_new

    @pl.when(j == nj - 1)
    def _():
        out = jnp.zeros((o_ref.shape[0], Cp), jnp.float32)
        for h in range(H):
            lo, hi = h * Cp, (h + 1) * Cp
            out = out + acc_sc[:, lo:hi] * (1.0 / l_sc[:, h:h + 1])
        # concat=False -> mean over heads, then GATv2 output bias.
        o_ref[...] = out * (1.0 / H) + bias_ref[...]


# ----------------------------------------------------------------------------
# GATBlock / GraphEncoder forward
# ----------------------------------------------------------------------------
def init_gat_block_params(key, input_dim, out_dim, n_head=1):
    F, C, H = input_dim, out_dim, n_head
    ks = jax.random.split(key, 9)
    s = 0.1
    return dict(
        W_l=s * jax.random.normal(ks[0], (F, H * C), jnp.float32),
        b_l=s * jax.random.normal(ks[1], (H * C,), jnp.float32),
        W_r=s * jax.random.normal(ks[2], (F, H * C), jnp.float32),
        b_r=s * jax.random.normal(ks[3], (H * C,), jnp.float32),
        W_e=s * jax.random.normal(ks[4], (F, H * C), jnp.float32),   # GATv2 lin_edge (no bias)
        att=s * jax.random.normal(ks[5], (H, C), jnp.float32),
        gat_bias=s * jax.random.normal(ks[6], (C,), jnp.float32),
        W_out=s * jax.random.normal(ks[7], (H * C, C), jnp.float32),  # GATBlock.lin_edge
        b_out=s * jax.random.normal(ks[8], (C,), jnp.float32),
        dims=(F, C, H),
    )


def gat_block_forward(params, x, edge_index, relations, relation_index):
    F_in, C, H = params["dims"]
    N = x.shape[0]
    R = relations.shape[0]
    HC = H * C

    Cp = _round_up(C, 128)                  # lane-dense per-head channel block
    HCp = H * Cp
    TILE = min(128, _round_up(N, 8))        # target-row tile == source-chunk tile
    Np = _round_up(N, TILE)
    TI = TS = TILE

    def pad_heads(w):                       # [..., H*C] -> [..., H*Cp] (zero-pad each head block)
        lead = w.shape[:-1]
        w = w.reshape(lead + (H, C))
        w = jnp.pad(w, [(0, 0)] * len(lead) + [(0, 0), (0, Cp - C)])
        return w.reshape(lead + (H * Cp,))

    # --- edge glue: merged relation-id map + mean self-loop attrs ----------------------------
    src = edge_index[0].astype(jnp.int32)
    dst = edge_index[1].astype(jnp.int32)
    edge_attr = relations[relation_index]                               # [E, F]

    # PyG: remove_self_loops, then add_self_loops(fill_value='mean') over incoming edges.
    not_self = (src != dst).astype(jnp.float32)
    sums = jnp.zeros((N, F_in), jnp.float32).at[dst].add(edge_attr * not_self[:, None])
    cnts = jnp.zeros((N,), jnp.float32).at[dst].add(not_self)
    selfloop_attr = sums / jnp.maximum(cnts, 1.0)[:, None]              # [N, F] (0 if isolated)

    diag = jnp.arange(Np)
    rid = jnp.full((Np, Np), -1, jnp.int32)
    rid = rid.at[dst, src].set(relation_index.astype(jnp.int32))
    rid = rid.at[diag, diag].set(R)                                     # self-loops (mean attr)
    # TODO(synk): duplicate (dst, src) edges collapse to one dense-adjacency entry (last wins);
    # PyG softmaxes parallel edges as separate logits.

    # --- hoisted, grid-invariant projections (computed ONCE, outside the grid) ---------------
    xp = jnp.pad(x.astype(jnp.float32), ((0, Np - N), (0, 0)))
    slp = jnp.pad(selfloop_attr, ((0, Np - N), (0, 0)))

    w_lr = jnp.concatenate([params["W_l"], params["W_r"]], axis=1)      # one fused x-projection
    b_lr = jnp.concatenate([params["b_l"], params["b_r"]])
    proj = xp @ w_lr + b_lr                                             # [Np, 2*HC]
    xl = pad_heads(proj[:, :HC])                                        # [Np, HCp]  W_l x + b_l
    xr = pad_heads(proj[:, HC:])                                        # [Np, HCp]  W_r x + b_r
    m_self = pad_heads(slp @ params["W_e"])                             # [Np, HCp]
    rel_proj = relations.astype(jnp.float32) @ params["W_e"]            # [R, HC] (= gnn.lin_edge(rel))
    rel_tab = pad_heads(rel_proj)                                       # [R, HCp]
    att = pad_heads(params["att"].reshape(1, HC))                       # [1, HCp]
    gat_bias = jnp.pad(params["gat_bias"], (0, Cp - C)).reshape(1, Cp)  # [1, Cp]

    # --- fused node-path kernel: (targets x source-chunks) grid, online softmax --------------
    grid = (Np // TI, Np // TS)
    x_out_p = pl.pallas_call(
        functools.partial(_fused_gatv2_kernel, H=H, Cp=Cp, R=R, NEG=-1e30),
        out_shape=jax.ShapeDtypeStruct((Np, Cp), jnp.float32),
        grid=grid,
        in_specs=[
            pl.BlockSpec((TS, HCp), lambda i, j: (j, 0)),    # W_l x + b_l   (source chunk)
            pl.BlockSpec((TI, HCp), lambda i, j: (i, 0)),    # W_l x + b_l   (target tile, self-loop)
            pl.BlockSpec((TI, HCp), lambda i, j: (i, 0)),    # W_r x + b_r   (target tile)
            pl.BlockSpec((TI, HCp), lambda i, j: (i, 0)),    # W_e selfloop_attr (target tile)
            pl.BlockSpec((R, HCp), lambda i, j: (0, 0)),     # projected relation table
            pl.BlockSpec((1, HCp), lambda i, j: (0, 0)),     # attention vector
            pl.BlockSpec((TI, TS), lambda i, j: (i, j)),     # merged relation-id / mask map (int32)
            pl.BlockSpec((1, Cp), lambda i, j: (0, 0)),      # GATv2 output bias
        ],
        out_specs=pl.BlockSpec((TI, Cp), lambda i, j: (i, 0)),
        scratch_shapes=[
            pltpu.VMEM((TI, H), jnp.float32),                # running max  (per head)
            pltpu.VMEM((TI, H), jnp.float32),                # running denominator
            pltpu.VMEM((TI, HCp), jnp.float32),              # running weighted-message accumulator
        ],
        compiler_params=pltpu.CompilerParams(
            dimension_semantics=("parallel", "arbitrary"),
            vmem_limit_bytes=48 * 1024 * 1024),
    )(xl, xl, xr, m_self, rel_tab, att, rid, gat_bias)
    x_out = x_out_p[:N, :C]

    # --- relations branch: relu(rel @ W_e) @ W_out + b_out (microscopic -> plain XLA) --------
    rel_out = jnp.maximum(rel_proj, 0.0) @ params["W_out"] + params["b_out"]

    return x_out, rel_out


def graph_encoder_forward(params_list, x, edge_index, relations, relation_index):
    # GraphEncoder: sequential GATBlocks (n_layers=1 here -> one block).
    for p in params_list:
        x, relations = gat_block_forward(p, x, edge_index, relations, relation_index)
    return x, relations


# ----------------------------------------------------------------------------
# Demo
# ----------------------------------------------------------------------------
if __name__ == "__main__":
    key = jax.random.PRNGKey(0)
    k_x, k_rel, k_par = jax.random.split(key, 3)

    N, input_dim, out_dim, n_head = 8, 16, 32, 1
    R, E = 4, 12

    x = jax.random.normal(k_x, (N, input_dim), jnp.float32)
    relations = jax.random.normal(k_rel, (R, input_dim), jnp.float32)

    src = jnp.array([0, 1, 2, 3, 4, 5, 6, 7, 0, 2, 4, 6], jnp.int32)
    dst = jnp.array([1, 2, 3, 4, 5, 6, 7, 0, 3, 5, 7, 1], jnp.int32)
    edge_index = jnp.stack([src, dst])                     # [2, E]
    relation_index = jnp.array([0, 1, 2, 3, 0, 1, 2, 3, 0, 1, 2, 3], jnp.int32)

    params = [init_gat_block_params(k_par, input_dim, out_dim, n_head)]  # n_layers=1

    x_out, rel_out = graph_encoder_forward(params, x, edge_index, relations, relation_index)
    jax.block_until_ready((x_out, rel_out))

    assert x_out.shape == (N, out_dim) and rel_out.shape == (R, out_dim)
    assert bool(jnp.all(jnp.isfinite(x_out))) and bool(jnp.all(jnp.isfinite(rel_out)))
    print("KERNEL_OK")
</pallas_src>

<mosaic_0001>
module attributes {stable_mosaic.version = 11 : i64} {
  func.func @_fused_gatv2_kernel(%arg0: i32, %arg1: i32, %arg2: memref<8x128xf32, #tpu.memory_space<vmem>>, %arg3: memref<8x128xf32, #tpu.memory_space<vmem>>, %arg4: memref<8x128xf32, #tpu.memory_space<vmem>>, %arg5: memref<8x128xf32, #tpu.memory_space<vmem>>, %arg6: memref<4x128xf32, #tpu.memory_space<vmem>>, %arg7: memref<1x128xf32, #tpu.memory_space<vmem>>, %arg8: memref<8x8xi32, #tpu.memory_space<vmem>>, %arg9: memref<1x128xf32, #tpu.memory_space<vmem>>, %arg10: memref<8x128xf32, #tpu.memory_space<vmem>>, %arg11: memref<8x1xf32, #tpu.memory_space<vmem>>, %arg12: memref<8x1xf32, #tpu.memory_space<vmem>>, %arg13: memref<8x128xf32, #tpu.memory_space<vmem>>) attributes {dimension_semantics = [#tpu.dimension_semantics<parallel>, #tpu.dimension_semantics<arbitrary>], iteration_bounds = array<i64: 1, 1>, scalar_prefetch = 0 : i64, scratch_operands = 3 : i64, tpu.core_type = #tpu.core_type<tc>, window_params = [{transform_indices = @transform_0, window_bounds = array<i64: 8, 128>}, {transform_indices = @transform_1, window_bounds = array<i64: 8, 128>}, {transform_indices = @transform_2, window_bounds = array<i64: 8, 128>}, {transform_indices = @transform_3, window_bounds = array<i64: 8, 128>}, {pipeline_mode = #tpu.pipeline_mode<synchronous>, transform_indices = @transform_4, window_bounds = array<i64: 4, 128>}, {pipeline_mode = #tpu.pipeline_mode<synchronous>, transform_indices = @transform_5, window_bounds = array<i64: 1, 128>}, {transform_indices = @transform_6, window_bounds = array<i64: 8, 8>}, {pipeline_mode = #tpu.pipeline_mode<synchronous>, transform_indices = @transform_7, window_bounds = array<i64: 1, 128>}, {transform_indices = @transform_8, window_bounds = array<i64: 8, 128>}]} {
    %c0_i32 = arith.constant 0 : i32
    %0 = arith.cmpi eq, %arg1, %c0_i32 : i32
    %1 = arith.extui %0 : i1 to i32
    %c0_i32_0 = arith.constant 0 : i32
    %2 = arith.cmpi ne, %1, %c0_i32_0 : i32
    scf.if %2 {
      %cst_40 = arith.constant -1.000000e+30 : f32
      %120 = vector.broadcast %cst_40 : f32 to vector<8x1xf32>
      %c0_41 = arith.constant 0 : index
      %c0_42 = arith.constant 0 : index
      %121 = vector.load %arg11[%c0_41, %c0_42] : memref<8x1xf32, #tpu.memory_space<vmem>>, vector<8x1xf32>
      tpu.vector_store %arg11[%c0_41, %c0_42], %120 {strides = array<i32>} : memref<8x1xf32, #tpu.memory_space<vmem>>, vector<8x1xf32>,
      %cst_43 = arith.constant 0.000000e+00 : f32
      %122 = vector.broadcast %cst_43 : f32 to vector<8x1xf32>
      %c0_44 = arith.constant 0 : index
      %c0_45 = arith.constant 0 : index
      %123 = vector.load %arg12[%c0_44, %c0_45] : memref<8x1xf32, #tpu.memory_space<vmem>>, vector<8x1xf32>
      tpu.vector_store %arg12[%c0_44, %c0_45], %122 {strides = array<i32>} : memref<8x1xf32, #tpu.memory_space<vmem>>, vector<8x1xf32>,
      %cst_46 = arith.constant 0.000000e+00 : f32
      %124 = vector.broadcast %cst_46 : f32 to vector<8x128xf32>
      %c0_47 = arith.constant 0 : index
      %c0_48 = arith.constant 0 : index
      %125 = vector.load %arg13[%c0_47, %c0_48] : memref<8x128xf32, #tpu.memory_space<vmem>>, vector<8x128xf32>
      tpu.vector_store %arg13[%c0_47, %c0_48], %124 {strides = array<i32>} : memref<8x128xf32, #tpu.memory_space<vmem>>, vector<8x128xf32>,
    } else {
    }
    %c0 = arith.constant 0 : index
    %c0_1 = arith.constant 0 : index
    %3 = vector.load %arg8[%c0, %c0_1] : memref<8x8xi32, #tpu.memory_space<vmem>>, vector<8x8xi32>
    %c0_i32_2 = arith.constant 0 : i32
    %4 = vector.broadcast %c0_i32_2 : i32 to vector<8x8xi32>
    %5 = arith.cmpi sge, %3, %4 : vector<8x8xi32>
    %c4_i32 = arith.constant 4 : i32
    %6 = vector.broadcast %c4_i32 : i32 to vector<8x8xi32>
    %7 = arith.cmpi eq, %3, %6 : vector<8x8xi32>
    %8 = arith.extui %5 : vector<8x8xi1> to vector<8x8xi32>
    %9 = arith.sitofp %8 : vector<8x8xi32> to vector<8x8xf32>
    %c0_3 = arith.constant 0 : index
    %c0_4 = arith.constant 0 : index
    %10 = vector.load %arg2[%c0_3, %c0_4] : memref<8x128xf32, #tpu.memory_space<vmem>>, vector<8x128xf32>
    %c0_5 = arith.constant 0 : index
    %c0_6 = arith.constant 0 : index
    %11 = vector.load %arg3[%c0_5, %c0_6] : memref<8x128xf32, #tpu.memory_space<vmem>>, vector<8x128xf32>
    %c0_7 = arith.constant 0 : index
    %c0_8 = arith.constant 0 : index
    %12 = vector.load %arg4[%c0_7, %c0_8] : memref<8x128xf32, #tpu.memory_space<vmem>>, vector<8x128xf32>
    %c0_9 = arith.constant 0 : index
    %c0_10 = arith.constant 0 : index
    %13 = vector.load %arg5[%c0_9, %c0_10] : memref<8x128xf32, #tpu.memory_space<vmem>>, vector<8x128xf32>
    %c0_11 = arith.constant 0 : index
    %c0_12 = arith.constant 0 : index
    %14 = vector.load %arg6[%c0_11, %c0_12] : memref<4x128xf32, #tpu.memory_space<vmem>>, vector<4x128xf32>
    %c0_13 = arith.constant 0 : index
    %c0_14 = arith.constant 0 : index
    %15 = vector.load %arg7[%c0_13, %c0_14] : memref<1x128xf32, #tpu.memory_space<vmem>>, vector<1x128xf32>
    %cst = arith.constant 0.000000e+00 : f32
    %16 = vector.broadcast %cst : f32 to vector<8x8x128xf32>
    %c0_i32_15 = arith.constant 0 : i32
    %17 = vector.broadcast %c0_i32_15 : i32 to vector<8x8xi32>
    %18 = arith.cmpi eq, %3, %17 : vector<8x8xi32>
    %19 = arith.extui %18 : vector<8x8xi1> to vector<8x8xi32>
    %20 = arith.sitofp %19 : vector<8x8xi32> to vector<8x8xf32>
    %21 = vector.shape_cast %20 : vector<8x8xf32> to vector<8x8x1xf32>
    %22 = vector.extract_strided_slice %14 {offsets = [0, 0], sizes = [1, 128], strides = [1, 1]} : vector<4x128xf32> to vector<1x128xf32>
    %23 = vector.shape_cast %22 : vector<1x128xf32> to vector<1x1x128xf32>
    %24 = vector.broadcast %21 : vector<8x8x1xf32> to vector<8x8x128xf32>
    %25 = vector.broadcast %23 : vector<1x1x128xf32> to vector<8x8x128xf32>
    %26 = arith.mulf %24, %25 : vector<8x8x128xf32>
    %27 = arith.addf %16, %26 : vector<8x8x128xf32>
    %c1_i32 = arith.constant 1 : i32
    %28 = vector.broadcast %c1_i32 : i32 to vector<8x8xi32>
    %29 = arith.cmpi eq, %3, %28 : vector<8x8xi32>
    %30 = arith.extui %29 : vector<8x8xi1> to vector<8x8xi32>
    %31 = arith.sitofp %30 : vector<8x8xi32> to vector<8x8xf32>
    %32 = vector.shape_cast %31 : vector<8x8xf32> to vector<8x8x1xf32>
    %33 = vector.extract_strided_slice %14 {offsets = [1, 0], sizes = [1, 128], strides = [1, 1]} : vector<4x128xf32> to vector<1x128xf32>
    %34 = vector.shape_cast %33 : vector<1x128xf32> to vector<1x1x128xf32>
    %35 = vector.broadcast %32 : vector<8x8x1xf32> to vector<8x8x128xf32>
    %36 = vector.broadcast %34 : vector<1x1x128xf32> to vector<8x8x128xf32>
    %37 = arith.mulf %35, %36 : vector<8x8x128xf32>
    %38 = arith.addf %27, %37 : vector<8x8x128xf32>
    %c2_i32 = arith.constant 2 : i32
    %39 = vector.broadcast %c2_i32 : i32 to vector<8x8xi32>
    %40 = arith.cmpi eq, %3, %39 : vector<8x8xi32>
    %41 = arith.extui %40 : vector<8x8xi1> to vector<8x8xi32>
    %42 = arith.sitofp %41 : vector<8x8xi32> to vector<8x8xf32>
    %43 = vector.shape_cast %42 : vector<8x8xf32> to vector<8x8x1xf32>
    %44 = vector.extract_strided_slice %14 {offsets = [2, 0], sizes = [1, 128], strides = [1, 1]} : vector<4x128xf32> to vector<1x128xf32>
    %45 = vector.shape_cast %44 : vector<1x128xf32> to vector<1x1x128xf32>
    %46 = vector.broadcast %43 : vector<8x8x1xf32> to vector<8x8x128xf32>
    %47 = vector.broadcast %45 : vector<1x1x128xf32> to vector<8x8x128xf32>
    %48 = arith.mulf %46, %47 : vector<8x8x128xf32>
    %49 = arith.addf %38, %48 : vector<8x8x128xf32>
    %c3_i32 = arith.constant 3 : i32
    %50 = vector.broadcast %c3_i32 : i32 to vector<8x8xi32>
    %51 = arith.cmpi eq, %3, %50 : vector<8x8xi32>
    %52 = arith.extui %51 : vector<8x8xi1> to vector<8x8xi32>
    %53 = arith.sitofp %52 : vector<8x8xi32> to vector<8x8xf32>
    %54 = vector.shape_cast %53 : vector<8x8xf32> to vector<8x8x1xf32>
    %55 = vector.extract_strided_slice %14 {offsets = [3, 0], sizes = [1, 128], strides = [1, 1]} : vector<4x128xf32> to vector<1x128xf32>
    %56 = vector.shape_cast %55 : vector<1x128xf32> to vector<1x1x128xf32>
    %57 = vector.broadcast %54 : vector<8x8x1xf32> to vector<8x8x128xf32>
    %58 = vector.broadcast %56 : vector<1x1x128xf32> to vector<8x8x128xf32>
    %59 = arith.mulf %57, %58 : vector<8x8x128xf32>
    %60 = arith.addf %49, %59 : vector<8x8x128xf32>
    %61 = vector.shape_cast %10 : vector<8x128xf32> to vector<1x8x128xf32>
    %62 = vector.shape_cast %12 : vector<8x128xf32> to vector<8x1x128xf32>
    %63 = vector.broadcast %61 : vector<1x8x128xf32> to vector<8x8x128xf32>
    %64 = vector.broadcast %62 : vector<8x1x128xf32> to vector<8x8x128xf32>
    %65 = arith.addf %63, %64 : vector<8x8x128xf32>
    %66 = arith.addf %65, %60 : vector<8x8x128xf32>
    %cst_16 = arith.constant 0.000000e+00 : f32
    %67 = vector.broadcast %cst_16 : f32 to vector<8x8x128xf32>
    %68 = arith.cmpf ogt, %66, %67 : vector<8x8x128xf32>
    %cst_17 = arith.constant 2.000000e-01 : f32
    %69 = vector.broadcast %cst_17 : f32 to vector<8x8x128xf32>
    %70 = arith.mulf %69, %66 : vector<8x8x128xf32>
    %71 = arith.select %68, %66, %70 : vector<8x8x128xi1>, vector<8x8x128xf32>
    %72 = vector.shape_cast %15 : vector<1x128xf32> to vector<1x1x128xf32>
    %73 = vector.broadcast %72 : vector<1x1x128xf32> to vector<8x8x128xf32>
    %74 = arith.mulf %71, %73 : vector<8x8x128xf32>
    %cst_18 = arith.constant dense<0.000000e+00> : vector<8x8xf32>
    %75 = vector.multi_reduction <add>, %74, %cst_18 [2] : vector<8x8x128xf32> to vector<8x8xf32>
    %76 = arith.addf %11, %12 : vector<8x128xf32>
    %77 = arith.addf %76, %13 : vector<8x128xf32>
    %cst_19 = arith.constant 0.000000e+00 : f32
    %78 = vector.broadcast %cst_19 : f32 to vector<8x128xf32>
    %79 = arith.cmpf ogt, %77, %78 : vector<8x128xf32>
    %cst_20 = arith.constant 2.000000e-01 : f32
    %80 = vector.broadcast %cst_20 : f32 to vector<8x128xf32>
    %81 = arith.mulf %80, %77 : vector<8x128xf32>
    %82 = arith.select %79, %77, %81 : vector<8x128xi1>, vector<8x128xf32>
    %83 = vector.broadcast %15 : vector<1x128xf32> to vector<8x128xf32>
    %84 = arith.mulf %82, %83 : vector<8x128xf32>
    %cst_21 = arith.constant dense<0.000000e+00> : vector<8xf32>
    %85 = vector.multi_reduction <add>, %84, %cst_21 [1] : vector<8x128xf32> to vector<8xf32>
    %86 = vector.shape_cast %85 : vector<8xf32> to vector<8x1xf32>
    %87 = vector.shape_cast %86 : vector<8x1xf32> to vector<8x1xf32>
    %88 = vector.broadcast %87 : vector<8x1xf32> to vector<8x8xf32>
    %89 = arith.select %7, %88, %75 : vector<8x8xi1>, vector<8x8xf32>
    %cst_22 = arith.constant -1.000000e+30 : f32
    %90 = vector.broadcast %cst_22 : f32 to vector<8x8xf32>
    %91 = arith.select %5, %89, %90 : vector<8x8xi1>, vector<8x8xf32>
    %c0_23 = arith.constant 0 : index
    %c0_24 = arith.constant 0 : index
    %92 = vector.load %arg11[%c0_23, %c0_24] : memref<8x1xf32, #tpu.memory_space<vmem>>, vector<8x1xf32>
    %cst_25 = arith.constant dense<0xFF800000> : vector<8xf32>
    %93 = vector.multi_reduction <maximumf>, %91, %cst_25 [1] : vector<8x8xf32> to vector<8xf32>
    %94 = vector.shape_cast %93 : vector<8xf32> to vector<8x1xf32>
    %95 = arith.maximumf %92, %94 : vector<8x1xf32>
    %96 = arith.subf %92, %95 : vector<8x1xf32>
    %97 = math.exp %96 : vector<8x1xf32>
    %98 = vector.broadcast %95 : vector<8x1xf32> to vector<8x8xf32>
    %99 = arith.subf %91, %98 : vector<8x8xf32>
    %100 = math.exp %99 : vector<8x8xf32>
    %101 = arith.mulf %100, %9 : vector<8x8xf32>
    %c0_26 = arith.constant 0 : index
    %c0_27 = arith.constant 0 : index
    %102 = vector.load %arg12[%c0_26, %c0_27] : memref<8x1xf32, #tpu.memory_space<vmem>>, vector<8x1xf32>
    %103 = arith.mulf %97, %102 : vector<8x1xf32>
    %cst_28 = arith.constant dense<0.000000e+00> : vector<8xf32>
    %104 = vector.multi_reduction <add>, %101, %cst_28 [1] : vector<8x8xf32> to vector<8xf32>
    %105 = vector.shape_cast %104 : vector<8xf32> to vector<8x1xf32>
    %106 = arith.addf %103, %105 : vector<8x1xf32>
    %c0_29 = arith.constant 0 : index
    %c0_30 = arith.constant 0 : index
    %107 = vector.load %arg12[%c0_29, %c0_30] : memref<8x1xf32, #tpu.memory_space<vmem>>, vector<8x1xf32>
    tpu.vector_store %arg12[%c0_29, %c0_30], %106 {strides = array<i32>} : memref<8x1xf32, #tpu.memory_space<vmem>>, vector<8x1xf32>,
    %c0_31 = arith.constant 0 : index
    %c0_32 = arith.constant 0 : index
    %108 = vector.load %arg13[%c0_31, %c0_32] : memref<8x128xf32, #tpu.memory_space<vmem>>, vector<8x128xf32>
    %109 = vector.broadcast %97 : vector<8x1xf32> to vector<8x128xf32>
    %110 = arith.mulf %109, %108 : vector<8x128xf32>
    %111 = arith.truncf %101 : vector<8x8xf32> to vector<8x8xbf16>
    %112 = arith.truncf %10 : vector<8x128xf32> to vector<8x128xbf16>
    %cst_33 = arith.constant dense<0.000000e+00> : vector<8x128xf32>
    %113 = tpu.matmul %111, %112, %cst_33 {dimension_numbers = #tpu.dot_dimension_numbers<[1], [0], [0], [1], [0, 0, 1, 1], [], []>} : vector<8x8xbf16>, vector<8x128xbf16>, vector<8x128xf32> -> vector<8x128xf32>
    %114 = arith.addf %110, %113 : vector<8x128xf32>
    %c0_34 = arith.constant 0 : index
    %c0_35 = arith.constant 0 : index
    %115 = vector.load %arg13[%c0_34, %c0_35] : memref<8x128xf32, #tpu.memory_space<vmem>>, vector<8x128xf32>
    tpu.vector_store %arg13[%c0_34, %c0_35], %114 {strides = array<i32>} : memref<8x128xf32, #tpu.memory_space<vmem>>, vector<8x128xf32>,
    %c0_36 = arith.constant 0 : index
    %c0_37 = arith.constant 0 : index
    %116 = vector.load %arg11[%c0_36, %c0_37] : memref<8x1xf32, #tpu.memory_space<vmem>>, vector<8x1xf32>
    tpu.vector_store %arg11[%c0_36, %c0_37], %95 {strides = array<i32>} : memref<8x1xf32, #tpu.memory_space<vmem>>, vector<8x1xf32>,
    %c0_i32_38 = arith.constant 0 : i32
    %117 = arith.cmpi eq, %arg1, %c0_i32_38 : i32
    %118 = arith.extui %117 : i1 to i32
    %c0_i32_39 = arith.constant 0 : i32
    %119 = arith.cmpi ne, %118, %c0_i32_39 : i32
    scf.if %119 {
      %cst_40 = arith.constant 0.000000e+00 : f32
      %120 = vector.broadcast %cst_40 : f32 to vector<8x128xf32>
      %c0_41 = arith.constant 0 : index
      %c0_42 = arith.constant 0 : index
      %121 = vector.load %arg13[%c0_41, %c0_42] : memref<8x128xf32, #tpu.memory_space<vmem>>, vector<8x128xf32>
      %c0_43 = arith.constant 0 : index
      %c0_44 = arith.constant 0 : index
      %122 = vector.load %arg12[%c0_43, %c0_44] : memref<8x1xf32, #tpu.memory_space<vmem>>, vector<8x1xf32>
      %cst_45 = arith.constant 1.000000e+00 : f32
      %123 = vector.broadcast %cst_45 : f32 to vector<8x1xf32>
      %124 = arith.divf %123, %122 : vector<8x1xf32>
      %125 = vector.broadcast %124 : vector<8x1xf32> to vector<8x128xf32>
      %126 = arith.mulf %121, %125 : vector<8x128xf32>
      %127 = arith.addf %120, %126 : vector<8x128xf32>
      %cst_46 = arith.constant 1.000000e+00 : f32
      %128 = vector.broadcast %cst_46 : f32 to vector<8x128xf32>
      %129 = arith.mulf %127, %128 : vector<8x128xf32>
      %c0_47 = arith.constant 0 : index
      %c0_48 = arith.constant 0 : index
      %130 = vector.load %arg9[%c0_47, %c0_48] : memref<1x128xf32, #tpu.memory_space<vmem>>, vector<1x128xf32>
      %131 = vector.broadcast %130 : vector<1x128xf32> to vector<8x128xf32>
      %132 = arith.addf %129, %131 : vector<8x128xf32>
      %c0_49 = arith.constant 0 : index
      %c0_50 = arith.constant 0 : index
      %133 = vector.load %arg10[%c0_49, %c0_50] : memref<8x128xf32, #tpu.memory_space<vmem>>, vector<8x128xf32>
      tpu.vector_store %arg10[%c0_49, %c0_50], %132 {strides = array<i32>} : memref<8x128xf32, #tpu.memory_space<vmem>>, vector<8x128xf32>,
    } else {
    }
    return
  }
  func.func @transform_0(%arg0: i32, %arg1: i32) -> (i32, i32) {
    %c0_i32 = arith.constant 0 : i32
    %c0_i32_0 = arith.constant 0 : i32
    return %arg1, %c0_i32 : i32, i32
  }
  func.func @transform_1(%arg0: i32, %arg1: i32) -> (i32, i32) {
    %c0_i32 = arith.constant 0 : i32
    %c0_i32_0 = arith.constant 0 : i32
    return %arg0, %c0_i32 : i32, i32
  }
  func.func @transform_2(%arg0: i32, %arg1: i32) -> (i32, i32) {
    %c0_i32 = arith.constant 0 : i32
    %c0_i32_0 = arith.constant 0 : i32
    return %arg0, %c0_i32 : i32, i32
  }
  func.func @transform_3(%arg0: i32, %arg1: i32) -> (i32, i32) {
    %c0_i32 = arith.constant 0 : i32
    %c0_i32_0 = arith.constant 0 : i32
    return %arg0, %c0_i32 : i32, i32
  }
  func.func @transform_4(%arg0: i32, %arg1: i32) -> (i32, i32) {
    %c0_i32 = arith.constant 0 : i32
    %c0_i32_0 = arith.constant 0 : i32
    %c0_i32_1 = arith.constant 0 : i32
    return %c0_i32, %c0_i32_0 : i32, i32
  }
  func.func @transform_5(%arg0: i32, %arg1: i32) -> (i32, i32) {
    %c0_i32 = arith.constant 0 : i32
    %c0_i32_0 = arith.constant 0 : i32
    %c0_i32_1 = arith.constant 0 : i32
    return %c0_i32, %c0_i32_0 : i32, i32
  }
  func.func @transform_6(%arg0: i32, %arg1: i32) -> (i32, i32) {
    %c0_i32 = arith.constant 0 : i32
    return %arg0, %arg1 : i32, i32
  }
  func.func @transform_7(%arg0: i32, %arg1: i32) -> (i32, i32) {
    %c0_i32 = arith.constant 0 : i32
    %c0_i32_0 = arith.constant 0 : i32
    %c0_i32_1 = arith.constant 0 : i32
    return %c0_i32, %c0_i32_0 : i32, i32
  }
  func.func @transform_8(%arg0: i32, %arg1: i32) -> (i32, i32) {
    %c0_i32 = arith.constant 0 : i32
    %c0_i32_0 = arith.constant 0 : i32
    return %arg0, %c0_i32 : i32, i32
  }
}

</mosaic_0001>

<bundles_post_ra>
// kernel: tpu_custom_call.1
= control target key start
LH: loop header
LB: loop body
LE: loop exit
PB: predicated region body
PF: predicated region fallthrough
CT: control target
= control target key end

     0   :  { %13 = vsyncpa [#allocation6], 0  ;;  %s1199_s0 = inlined_call_operand.hbm [shape: f32[8,128], index: 0, kind: input, shape index: {}]   ;;  %s1200_s1 = inlined_call_operand.hbm [shape: f32[8,128], index: 1, kind: input, shape index: {}]   ;;  %s1201_s2 = inlined_call_operand.hbm [shape: f32[8,128], index: 2, kind: input, shape index: {}]   ;;  %s1202_s3 = inlined_call_operand.vmem [shape: f32[8,128], index: 3, kind: input, shape index: {}]   ;;  %s1203_s4 = inlined_call_operand.hbm [shape: f32[4,128], index: 4, kind: input, shape index: {}]   ;;  %s1204_s5 = inlined_call_operand.vmem [shape: f32[1,128], index: 5, kind: input, shape index: {}]   ;;  %s1205_s6 = inlined_call_operand.vmem [shape: s32[8,8], index: 6, kind: input, shape index: {}]   ;;  %s1206_s7 = inlined_call_operand.vmem [shape: f32[1,128], index: 7, kind: input, shape index: {}]   ;;  %s1207_s8 = inlined_call_operand.hbm [shape: f32[8,128], index: 8, kind: output, shape index: {}]  }
   0x1   :  { %14 = vsyncpa [#allocation9], 0 }
   0x2   :  { %15 = vsyncpa [#allocation12], 0 }
   0x3   :  { %16 = vsyncpa [#allocation7], 0  ;;  %s918_s27 = smov [#allocation8]   ;;  %s919_s29 = smov [#allocation5]  }
   0x4   :  { %s33_s28 = sshll.u32 %s918_s27, 4  ;;  %s23_s30 = sshll.u32 %s919_s29, 4  ;;  %s34_s28 = int_to_ptr.vmem [resolvable:$true] %s33_s28  ;;  %s24_s30 = int_to_ptr.vmem [resolvable:$true] %s23_s30 }
   0x5   :  { %s800_s11 = scalar_lea.hbm %s1200_s1, 128 }
   0x6   :  { %p801_p0 = scmp.ne.s32.totalorder %s1200_s1, %s800_s11  ;;  %p804_p1 = scmp.lt.u32.totalorder %s800_s11, %s1200_s1 }
   0x8   :  { %p806_p2 = pnand %p804_p1, %p801_p0 }
   0xa   :  { %809 = shalt.err (!%p806_p2)
}
   0xb   :  { %s810_s16 = scalar_lea.vmem %s34_s28, 128  ;;  %p815_p4 = scmp.lt.s32.totalorder %s34_s28, %s34_s28 }
   0xc   :  { %p811_p3 = scmp.ne.s32.totalorder %s34_s28, %s810_s16  ;;  %p816_p5 = scmp.lt.s32.totalorder %s810_s16, %s810_s16 }
   0xe   :  { %p817_p6 = por %p816_p5, %p815_p4 }
  0x10   :  { %p818_p7 = pnand %p817_p6, %p811_p3 }
  0x12   :  { %821 = shalt.err (!%p818_p7)
}
  0x13   :  { %36 = dma.hbm_to_vmem [thread:$0]  %s1200_s1, 128, %s34_s28, [#allocation9]  }
  0x14   :  { %s822_s21 = scalar_lea.hbm %s1199_s0, 128 }
  0x15   :  { %p823_p8 = scmp.ne.s32.totalorder %s1199_s0, %s822_s21  ;;  %p826_p9 = scmp.lt.u32.totalorder %s822_s21, %s1199_s0 }
  0x17   :  { %p828_p10 = pnand %p826_p9, %p823_p8 }
  0x19   :  { %831 = shalt.err (!%p828_p10)
}
  0x1a   :  { %s832_s26 = scalar_lea.vmem %s24_s30, 128  ;;  %p837_p12 = scmp.lt.s32.totalorder %s24_s30, %s24_s30 }
  0x1b   :  { %p833_p11 = scmp.ne.s32.totalorder %s24_s30, %s832_s26  ;;  %p838_p13 = scmp.lt.s32.totalorder %s832_s26, %s832_s26 }
  0x1d   :  { %p839_p0 = por %p838_p13, %p837_p12 }
  0x1f   :  { %p840_p1 = pnand %p839_p0, %p833_p11 }
  0x21   :  { %843 = shalt.err (!%p840_p1)
}
  0x22   :  { %26 = dma.hbm_to_vmem [thread:$0]  %s1199_s0, 128, %s24_s30, [#allocation6]  }
  0x23   :  { %s920_s28 = smov [#allocation10]   ;;  %s921_s9 = smov [#allocation11]  }
  0x24   :  { %s43_s29 = sshll.u32 %s920_s28, 4  ;;  %s55_s10 = sshll.u32 %s921_s9, 4  ;;  %s44_s29 = int_to_ptr.vmem [resolvable:$true] %s43_s29  ;;  %s56_s10 = int_to_ptr.vmem [resolvable:$true] %s55_s10 }
  0x25   :  { %s844_s13 = scalar_lea.hbm %s1201_s2, 128 }
  0x26   :  { %p845_p2 = scmp.ne.s32.totalorder %s1201_s2, %s844_s13  ;;  %p848_p3 = scmp.lt.u32.totalorder %s844_s13, %s1201_s2 }
  0x28   :  { %p850_p4 = pnand %p848_p3, %p845_p2 }
  0x2a   :  { %853 = shalt.err (!%p850_p4)
}
  0x2b   :  { %s854_s0 = scalar_lea.vmem %s44_s29, 128  ;;  %p859_p6 = scmp.lt.s32.totalorder %s44_s29, %s44_s29 }
  0x2c   :  { %p855_p5 = scmp.ne.s32.totalorder %s44_s29, %s854_s0  ;;  %p860_p7 = scmp.lt.s32.totalorder %s854_s0, %s854_s0 }
  0x2e   :  { %p861_p8 = por %p860_p7, %p859_p6 }
  0x30   :  { %p862_p9 = pnand %p861_p8, %p855_p5 }
  0x32   :  { %865 = shalt.err (!%p862_p9)
}
  0x33   :  { %46 = dma.hbm_to_vmem [thread:$0]  %s1201_s2, 128, %s44_s29, [#allocation9]  }
  0x34   :  { %s866_s21 = scalar_lea.hbm %s1203_s4, 64 }
  0x35   :  { %p867_p10 = scmp.ne.s32.totalorder %s1203_s4, %s866_s21  ;;  %p870_p11 = scmp.lt.u32.totalorder %s866_s21, %s1203_s4 }
  0x37   :  { %p872_p12 = pnand %p870_p11, %p867_p10 }
  0x39   :  { %875 = shalt.err (!%p872_p12)
}
  0x3a   :  { %s876_s26 = scalar_lea.vmem %s56_s10, 64  ;;  %p881_p0 = scmp.lt.s32.totalorder %s56_s10, %s56_s10 }
  0x3b   :  { %p877_p13 = scmp.ne.s32.totalorder %s56_s10, %s876_s26  ;;  %p882_p1 = scmp.lt.s32.totalorder %s876_s26, %s876_s26 }
  0x3d   :  { %p883_p2 = por %p882_p1, %p881_p0 }
  0x3f   :  { %p884_p3 = pnand %p883_p2, %p877_p13 }
  0x41   :  { %887 = shalt.err (!%p884_p3)
}
  0x42   :  { %58 = dma.hbm_to_vmem [thread:$0]  %s1203_s4, 64, %s56_s10, [#allocation12]  }
  0x43   :  { %910 = dma.done.wait [#allocation6], 128  }
  0x44   :  { %911 = vsyncadd [#allocation6], 4294967168 }
  0x45   :  { %912 = dma.done.wait [#allocation9], 256  }
  0x46   :  { %913 = vsyncadd [#allocation9], 4294967040 }
  0x47   :  { %914 = dma.done.wait [#allocation12], 64  }
  0x48   :  { %915 = vsyncadd [#allocation12], 4294967232  ;;  %v100_v0 = vlaneseq  ;;  %v922_v1 = vmov 0.0   ;;  %v1031_v4 = vld [vmem:[%s1205_s6] sm:$0xff]  ;;  %v95_v48 = vld [vmem:[#allocation11] sm:$0xf] }
  0x49   :  { %775 = vmatprep.subr.bf16.mxu0 %v922_v1  ;;  %vm176_vm0 = vcmp.eq.s32.totalorder %v1031_v4, 1  ;;  %vm97_vm1 = vcmp.eq.s32.totalorder %v1031_v4, 0  ;;  %vm255_vm2 = vcmp.eq.s32.totalorder %v1031_v4, 2  ;;  %vm334_vm3 = vcmp.eq.s32.totalorder %v1031_v4, 3  ;;  %s927_s10 = smov [#allocation13]  }
  0x4a   :  { %v1023_v2 = vshrl.u32 %v100_v0, 7  ;;  %v767_v6 = vsel %vm176_vm0, 1.0, %v922_v1  ;;  %v766_v7 = vsel %vm97_vm1, 1.0, %v922_v1  ;;  %v768_v18 = vsel %vm255_vm2, 1.0, %v922_v1  ;;  %s754_s11 = sshll.u32 %s927_s10, 4  ;;  %s755_s11 = int_to_ptr.vmem [resolvable:$true] %s754_s11 }
  0x4b   :  { %v769_v29 = vsel %vm334_vm3, 1.0, %v922_v1  ;;  %v923_v60 = vmov 1966171168   ;;  %vm82_vm13 = vcmask 7168   ;;  %vm623_vm14 = vcmask 1041409   ;;  %s888_s12 = scalar_lea.vmem %s755_s11, 128  ;;  %p893_p5 = scmp.lt.s32.totalorder %s755_s11, %s755_s11 }
  0x4c   :  { %v1026_v3 = vsub.s32 0, %v1023_v2  ;;  %v1036_v5 = vsub.s32 1, %v1023_v2  ;;  %v1045_v12 = vsub.s32 2, %v1023_v2  ;;  %v1050_v15 = vsub.s32 3, %v1023_v2  ;;  %84 = vst.msk [vmem:[#allocation3] sm:$0xff] %vm82_vm13, %v922_v1  ;;  %p889_p4 = scmp.ne.s32.totalorder %s755_s11, %s888_s12  ;;  %p894_p6 = scmp.lt.s32.totalorder %s888_s12, %s888_s12 }
  0x4d   :  { %v130_v21 = vsub.s32 4, %v1023_v2  ;;  %v137_v24 = vsub.s32 5, %v1023_v2  ;;  %v144_v32 = vsub.s32 6, %v1023_v2  ;;  %v151_v37 = vsub.s32 7, %v1023_v2 }
  0x4e   :  { %v182_v8 = vrot.slane %v767_v6, %v1026_v3  ;;  %v103_v9 = vrot.slane %v766_v7, %v1026_v3  ;;  %v189_v10 = vrot.slane %v767_v6, %v1036_v5  ;;  %v110_v11 = vrot.slane %v766_v7, %v1036_v5  ;;  %p895_p7 = por %p894_p6, %p893_p5 }
  0x4f   :  { %v196_v13 = vrot.slane %v767_v6, %v1045_v12  ;;  %v117_v14 = vrot.slane %v766_v7, %v1045_v12  ;;  %v203_v16 = vrot.slane %v767_v6, %v1050_v15  ;;  %v124_v17 = vrot.slane %v766_v7, %v1050_v15 }
  0x50   :  { %184 = vbcast.lane.b32.xlu1 %v182_v8, 256  ;;  %105 = vbcast.lane.b32.xlu0 %v103_v9, 256  ;;  %v268_v19 = vrot.slane %v768_v18, %v1036_v5  ;;  %v261_v20 = vrot.slane %v768_v18, %v1026_v3  ;;  %v210_v22 = vrot.slane %v767_v6, %v130_v21  ;;  %v416_v61 = vunpack.c.l.s4 %v923_v60  ;;  %p896_p8 = pnand %p895_p7, %p889_p4 }
  0x51   :  { %v131_v23 = vrot.slane %v766_v7, %v130_v21  ;;  %v138_v25 = vrot.slane %v766_v7, %v137_v24  ;;  %v275_v26 = vrot.slane %v768_v18, %v1045_v12  ;;  %v282_v27 = vrot.slane %v768_v18, %v1050_v15 }
  0x52   :  { %v217_v28 = vrot.slane %v767_v6, %v137_v24  ;;  %v347_v30 = vrot.slane %v769_v29, %v1036_v5  ;;  %v340_v31 = vrot.slane %v769_v29, %v1026_v3  ;;  %v224_v33 = vrot.slane %v767_v6, %v144_v32 }
  0x53   :  { %v145_v34 = vrot.slane %v766_v7, %v144_v32  ;;  %v354_v35 = vrot.slane %v769_v29, %v1045_v12  ;;  %v289_v36 = vrot.slane %v768_v18, %v130_v21  ;;  %v231_v38 = vrot.slane %v767_v6, %v151_v37 }
  0x54   :  { %191 = vbcast.lane.b32.xlu1 %v189_v10, 256  ;;  %112 = vbcast.lane.b32.xlu0 %v110_v11, 256  ;;  %v152_v39 = vrot.slane %v766_v7, %v151_v37  ;;  %v361_v40 = vrot.slane %v769_v29, %v1050_v15  ;;  %v296_v41 = vrot.slane %v768_v18, %v137_v24  ;;  %v417_v8 = vunpack.c.0.s8 %v416_v61 }
  0x55   :  { %v368_v42 = vrot.slane %v769_v29, %v130_v21  ;;  %v303_v43 = vrot.slane %v768_v18, %v144_v32  ;;  %v375_v44 = vrot.slane %v769_v29, %v137_v24  ;;  %v310_v45 = vrot.slane %v768_v18, %v151_v37  ;;  %v1090_v18 = vld [vmem:[#allocation10] sm:$0xff] }
  0x56   :  { %v389_v46 = vrot.slane %v769_v29, %v151_v37  ;;  %v382_v47 = vrot.slane %v769_v29, %v144_v32  ;;  %v1071_v49 = vrot.slane %v95_v48, %v1036_v5  ;;  %v1074_v50 = vrot.slane %v95_v48, %v1026_v3 }
  0x57   :  { %vm625_vm15 = vcmask 1042434   ;;  %vm627_vm0 = vcmask 1043459   ;;  %vm629_vm1 = vcmask 1044484   ;;  %vm631_vm2 = vcmask 1045509  }
  0x58   :  { %198 = vbcast.lane.b32.xlu1 %v196_v13, 256  ;;  %119 = vbcast.lane.b32.xlu0 %v117_v14, 256  ;;  %v1083_v13 = vrot.slane %v95_v48, %v1045_v12  ;;  %vm633_vm3 = vcmask 1046534  }
  0x5c   :  { %205 = vbcast.lane.b32.xlu1 %v203_v16, 256  ;;  %126 = vbcast.lane.b32.xlu0 %v124_v17, 256  ;;  %v1088_v17 = vsub.s32 %v417_v8, %v1023_v2 }
  0x5e   :  { %v421_v12 = vrot.slane %v1090_v18, %v1088_v17 }
  0x60   :  { %270 = vbcast.lane.b32.xlu1 %v268_v19, 256  ;;  %263 = vbcast.lane.b32.xlu0 %v261_v20, 256 }
  0x64   :  { %212 = vbcast.lane.b32.xlu1 %v210_v22, 256  ;;  %133 = vbcast.lane.b32.xlu0 %v131_v23, 256 }
  0x68   :  { %140 = vbcast.lane.b32.xlu1 %v138_v25, 256  ;;  %277 = vbcast.lane.b32.xlu0 %v275_v26, 256 }
  0x6c   :  { %284 = vbcast.lane.b32.xlu1 %v282_v27, 256  ;;  %219 = vbcast.lane.b32.xlu0 %v217_v28, 256 }
  0x70   :  { %349 = vbcast.lane.b32.xlu1 %v347_v30, 256  ;;  %342 = vbcast.lane.b32.xlu0 %v340_v31, 256  ;;  %v429_v30 = vcombine.high %v421_v12, %v421_v12 }
  0x74   :  { %226 = vbcast.lane.b32.xlu1 %v224_v33, 256  ;;  %147 = vbcast.lane.b32.xlu0 %v145_v34, 256  ;;  %v437_v34 = vrot.slane %v421_v12, %v1088_v17 }
  0x78   :  { %356 = vbcast.lane.b32.xlu1 %v354_v35, 256  ;;  %291 = vbcast.lane.b32.xlu0 %v289_v36, 256  ;;  %v451_v36 = vrot.slane %v429_v30, %v1088_v17 }
  0x7c   :  { %233 = vbcast.lane.b32.xlu1 %v231_v38, 256  ;;  %154 = vbcast.lane.b32.xlu0 %v152_v39, 256  ;;  %v1102_v38 = vrot.slane %v95_v48, %v1050_v15  ;;  %v459_v15 = vcombine.high %v437_v34, %v437_v34 }
  0x7e   :  { %v474_v61 = vrot.slane %v459_v15, %v1026_v3 }
  0x80   :  { %363 = vbcast.lane.b32.xlu1 %v361_v40, 256  ;;  %298 = vbcast.lane.b32.xlu0 %v296_v41, 256  ;;  %v466_v41 = vrot.slane %v437_v34, %v1026_v3 }
  0x84   :  { %370 = vbcast.lane.b32.xlu1 %v368_v42, 256  ;;  %305 = vbcast.lane.b32.xlu0 %v303_v43, 256 }
  0x88   :  { %377 = vbcast.lane.b32.xlu1 %v375_v44, 256  ;;  %312 = vbcast.lane.b32.xlu0 %v310_v45, 256  ;;  %v470_v45 = vrot.slane %v451_v36, %v1026_v3 }
  0x8c   :  { %391 = vbcast.lane.b32.xlu1 %v389_v46, 256  ;;  %384 = vbcast.lane.b32.xlu0 %v382_v47, 256  ;;  %v1109_v46 = vld [vmem:[#allocation5] sm:$0xff] }
  0x8d   :  { %v504_v48 = vadd.f32 %v470_v45, %v1109_v46 }
  0xc2   :  { %v185_v51 = vpop.permute.xlu1 %184  ;;  %v106_v52 = vpop.permute.xlu0 %105 }
  0xc3   :  { %v239_v53 = vmul.f32 %v1071_v49, %v185_v51  ;;  %v160_v54 = vmul.f32 %v1074_v50, %v106_v52 }
  0xc5   :  { %v247_v55 = vadd.f32 %v239_v53, %v160_v54 }
  0xc6   :  { %v192_v56 = vpop.permute.xlu1 %191  ;;  %v113_v57 = vpop.permute.xlu0 %112 }
  0xc7   :  { %v240_v58 = vmul.f32 %v1071_v49, %v192_v56  ;;  %v161_v59 = vmul.f32 %v1074_v50, %v113_v57 }
  0xc9   :  { %v248_v62 = vadd.f32 %v240_v58, %v161_v59 }
  0xca   :  { %v199_v63 = vpop.permute.xlu1 %198  ;;  %v120_v5 = vpop.permute.xlu0 %119 }
  0xcb   :  { %v241_v6 = vmul.f32 %v1071_v49, %v199_v63  ;;  %v162_v7 = vmul.f32 %v1074_v50, %v120_v5 }
  0xcd   :  { %v249_v9 = vadd.f32 %v241_v6, %v162_v7 }
  0xce   :  { %v206_v10 = vpop.permute.xlu1 %205  ;;  %v127_v11 = vpop.permute.xlu0 %126 }
  0xcf   :  { %v242_v14 = vmul.f32 %v1071_v49, %v206_v10  ;;  %v163_v16 = vmul.f32 %v1074_v50, %v127_v11  ;;  %v505_v11 = vadd.f32 %v474_v61, %v1109_v46  ;;  %v92_v61 = vld [vmem:[#allocation8] sm:$0xff] }
  0xd1   :  { %v250_v19 = vadd.f32 %v242_v14, %v163_v16 }
  0xd2   :  { %v271_v20 = vpop.permute.xlu1 %270  ;;  %v264_v21 = vpop.permute.xlu0 %263 }
  0xd3   :  { %v319_v22 = vmul.f32 %v1083_v13, %v271_v20  ;;  %v318_v23 = vmul.f32 %v1083_v13, %v264_v21  ;;  %v461_v20 = vcombine.high %v451_v36, %v451_v36 }
  0xd5   :  { %v327_v24 = vadd.f32 %v319_v22, %v248_v62  ;;  %v326_v25 = vadd.f32 %v318_v23, %v247_v55  ;;  %v503_v55 = vadd.f32 %v466_v41, %v1109_v46  ;;  %v414_v62 = vcombine.high %v1090_v18, %v1090_v18 }
  0xd6   :  { %v213_v26 = vpop.permute.xlu1 %212  ;;  %v134_v27 = vpop.permute.xlu0 %133 }
  0xd7   :  { %v243_v28 = vmul.f32 %v1071_v49, %v213_v26  ;;  %v164_v29 = vmul.f32 %v1074_v50, %v134_v27  ;;  %v428_v12 = vrot.slane %v414_v62, %v1088_v17 }
  0xd9   :  { %v251_v31 = vadd.f32 %v243_v28, %v164_v29 }
  0xda   :  { %v141_v32 = vpop.permute.xlu1 %140  ;;  %v278_v33 = vpop.permute.xlu0 %277 }
  0xdb   :  { %v320_v35 = vmul.f32 %v1083_v13, %v278_v33  ;;  %v165_v42 = vmul.f32 %v1074_v50, %v141_v32  ;;  %v478_v32 = vrot.slane %v461_v20, %v1026_v3  ;;  %v430_v33 = vcombine.high %v428_v12, %v428_v12 }
  0xdd   :  { %v328_v37 = vadd.f32 %v320_v35, %v249_v9  ;;  %v1123_v9 = vld [vmem:[%s1204_s5] ss:$0 sm:$0xff] }
  0xde   :  { %v285_v39 = vpop.permute.xlu1 %284  ;;  %v220_v40 = vpop.permute.xlu0 %219 }
  0xdf   :  { %v321_v43 = vmul.f32 %v1083_v13, %v285_v39  ;;  %v244_v44 = vmul.f32 %v1071_v49, %v220_v40  ;;  %v444_v39 = vrot.slane %v428_v12, %v1088_v17 }
  0xe1   :  { %v329_v47 = vadd.f32 %v321_v43, %v250_v19  ;;  %v252_v51 = vadd.f32 %v244_v44, %v165_v42  ;;  %v458_v43 = vrot.slane %v430_v33, %v1088_v17 }
  0xe2   :  { %v350_v52 = vpop.permute.xlu1 %349  ;;  %v343_v53 = vpop.permute.xlu0 %342 }
  0xe3   :  { %v398_v54 = vmul.f32 %v1102_v38, %v350_v52  ;;  %v397_v56 = vmul.f32 %v1102_v38, %v343_v53 }
  0xe5   :  { %v406_v57 = vadd.f32 %v398_v54, %v327_v24  ;;  %v405_v58 = vadd.f32 %v397_v56, %v326_v25  ;;  %v462_v56 = vcombine.high %v458_v43, %v458_v43 }
  0xe6   :  { %v227_v59 = vpop.permute.xlu1 %226  ;;  %v148_v60 = vpop.permute.xlu0 %147 }
  0xe7   :  { %v512_v63 = vadd.f32 %v504_v48, %v406_v57  ;;  %v511_v5 = vadd.f32 %v503_v55, %v405_v58  ;;  %v245_v6 = vmul.f32 %v1071_v49, %v227_v59  ;;  %v166_v7 = vmul.f32 %v1074_v50, %v148_v60 }
  0xe8   :  { %v486_v55 = vrot.slane %v458_v43, %v1026_v3  ;;  %v460_v57 = vcombine.high %v444_v39, %v444_v39 }
  0xe9   :  { %v253_v8 = vadd.f32 %v245_v6, %v166_v7  ;;  %vm520_vm4 = vcmp.gt.f32.partialorder %v512_v63, 0.0  ;;  %v528_v10 = vmul.f32 0.2, %v512_v63  ;;  %vm519_vm5 = vcmp.gt.f32.partialorder %v511_v5, 0.0 }
  0xea   :  { %v357_v14 = vpop.permute.xlu1 %356  ;;  %v292_v16 = vpop.permute.xlu0 %291  ;;  %v527_v19 = vmul.f32 0.2, %v511_v5  ;;  %v494_v7 = vrot.slane %v462_v56, %v1026_v3 }
  0xeb   :  { %v399_v21 = vmul.f32 %v1102_v38, %v357_v14  ;;  %v322_v22 = vmul.f32 %v1083_v13, %v292_v16  ;;  %v536_v23 = vsel %vm520_vm4, %v512_v63, %v528_v10  ;;  %v490_v10 = vrot.slane %v460_v57, %v1026_v3 }
  0xec   :  { %v550_v24 = vmul.f32 %v1123_v9, %v536_v23  ;;  %v535_v25 = vsel %vm519_vm5, %v511_v5, %v527_v19  ;;  %vm635_vm4 = vcmask 1047559   ;;  %vm88_vm5 = vcmp.eq.s32.totalorder %v1031_v4, 4 }
  0xed   :  { %v407_v26 = vadd.f32 %v399_v21, %v328_v37  ;;  %v330_v27 = vadd.f32 %v322_v22, %v251_v31  ;;  %v549_v28 = vmul.f32 %v1123_v9, %v535_v25  ;;  %v506_v31 = vadd.f32 %v478_v32, %v1109_v46 }
  0xee   :  { %v234_v29 = vpop.permute.xlu1 %233  ;;  %559 = vadd.xlane.f32.xlu1 %v550_v24  ;;  %v155_v30 = vpop.permute.xlu0 %154 }
  0xef   :  { %v513_v34 = vadd.f32 %v505_v11, %v407_v26  ;;  %v246_v35 = vmul.f32 %v1071_v49, %v234_v29  ;;  %557 = vadd.xlane.f32.xlu0 %v549_v28  ;;  %v167_v36 = vmul.f32 %v1074_v50, %v155_v30  ;;  %v482_v49 = vrot.slane %v444_v39, %v1026_v3 }
  0xf0   :  { %v573_v11 = vadd.f32 %v1090_v18, %v92_v61  ;;  %v510_v3 = vadd.f32 %v494_v7, %v1109_v46  ;;  %v509_v18 = vadd.f32 %v490_v10, %v1109_v46 }
  0xf1   :  { %v254_v40 = vadd.f32 %v246_v35, %v167_v36  ;;  %vm521_vm6 = vcmp.gt.f32.partialorder %v513_v34, 0.0  ;;  %v529_v37 = vmul.f32 0.2, %v513_v34  ;;  %v507_v17 = vadd.f32 %v482_v49, %v1109_v46 }
  0xf2   :  { %v364_v41 = vpop.permute.xlu1 %363  ;;  %v299_v42 = vpop.permute.xlu0 %298 }
  0xf3   :  { %v400_v44 = vmul.f32 %v1102_v38, %v364_v41  ;;  %v323_v45 = vmul.f32 %v1083_v13, %v299_v42  ;;  %v537_v52 = vsel %vm521_vm6, %v513_v34, %v529_v37  ;;  %vm87_vm6 = vcmp.ge.s32.totalorder %v1031_v4, 0 }
  0xf4   :  { %v551_v50 = vmul.f32 %v1123_v9, %v537_v52  ;;  %v924_v52 = vmov -1e+30  }
  0xf5   :  { %v408_v53 = vadd.f32 %v400_v44, %v329_v47  ;;  %v331_v15 = vadd.f32 %v323_v45, %v252_v51  ;;  %v508_v51 = vadd.f32 %v486_v55, %v1109_v46  ;;  %83 = vst.msk [vmem:[#allocation2] sm:$0xff] %vm82_vm13, %v924_v52 }
  0xf6   :  { %v371_v48 = vpop.permute.xlu1 %370  ;;  %561 = vadd.xlane.f32.xlu0 %v551_v50  ;;  %v306_v54 = vpop.permute.xlu0 %305 }
  0xf7   :  { %v514_v58 = vadd.f32 %v506_v31, %v408_v53  ;;  %v401_v59 = vmul.f32 %v1102_v38, %v371_v48  ;;  %v324_v60 = vmul.f32 %v1083_v13, %v306_v54  ;;  %v590_v53 = vand.u32 127, %v100_v0 }
  0xf9   :  { %v409_v62 = vadd.f32 %v401_v59, %v330_v27  ;;  %v332_v63 = vadd.f32 %v324_v60, %v253_v8  ;;  %vm522_vm7 = vcmp.gt.f32.partialorder %v514_v58, 0.0  ;;  %v530_v47 = vmul.f32 0.2, %v514_v58  ;;  %v94_v8 = vld [vmem:[%s1202_s3] sm:$0xff] }
  0xfa   :  { %v378_v5 = vpop.permute.xlu1 %377  ;;  %v313_v6 = vpop.permute.xlu0 %312  ;;  %v574_v26 = vadd.f32 %v573_v11, %v94_v8  ;;  %v593_v48 = vsub.s32 %v590_v53, %v1023_v2  ;;  %v925_v8 = vmov 0  }
  0xfb   :  { %v515_v14 = vadd.f32 %v507_v17, %v409_v62  ;;  %v402_v16 = vmul.f32 %v1102_v38, %v378_v5  ;;  %v325_v19 = vmul.f32 %v1083_v13, %v313_v6  ;;  %v538_v20 = vsel %vm522_vm7, %v514_v58, %v530_v47  ;;  %791 = vset.pattern.permute.xlu1 %v925_v8 }
  0xfc   :  { %v552_v21 = vmul.f32 %v1123_v9, %v538_v20  ;;  %vm575_vm10 = vcmp.gt.f32.partialorder %v574_v26, 0.0  ;;  %vm641_vm7 = vcmask 64512   ;;  %792 = vset.pattern.permute.xlu0 %v925_v8 }
  0xfd   :  { %v410_v22 = vadd.f32 %v402_v16, %v331_v15  ;;  %v333_v23 = vadd.f32 %v325_v19, %v254_v40  ;;  %vm523_vm8 = vcmp.gt.f32.partialorder %v515_v14, 0.0  ;;  %v531_v12 = vmul.f32 0.2, %v515_v14 }
  0xfe   :  { %v392_v24 = vpop.permute.xlu1 %391  ;;  %563 = vadd.xlane.f32.xlu0 %v552_v21  ;;  %v385_v25 = vpop.permute.xlu0 %384  ;;  %v576_v40 = vmul.f32 0.2, %v574_v26  ;;  %v640_v21 = vld [vmem:[#allocation2] sm:$0xff] }
  0xff   :  { %v516_v13 = vadd.f32 %v508_v51, %v410_v22  ;;  %v404_v27 = vmul.f32 %v1102_v38, %v392_v24  ;;  %v403_v28 = vmul.f32 %v1102_v38, %v385_v25  ;;  %v539_v29 = vsel %vm523_vm8, %v515_v14, %v531_v12 }
 0x100   :  { %v553_v30 = vmul.f32 %v1123_v9, %v539_v29  ;;  %v577_v43 = vsel %vm575_vm10, %v574_v26, %v576_v40  ;;  %vm678_vm8 = vcmask 1043456  }
 0x101   :  { %v412_v32 = vadd.f32 %v404_v27, %v333_v23  ;;  %v411_v33 = vadd.f32 %v403_v28, %v332_v63  ;;  %vm524_vm9 = vcmp.gt.f32.partialorder %v516_v13, 0.0  ;;  %v532_v34 = vmul.f32 0.2, %v516_v13 }
 0x102   :  { %565 = vadd.xlane.f32.xlu1 %v553_v30  ;;  %v578_v49 = vmul.f32 %v1123_v9, %v577_v43  ;;  %v772_v43 = vld [vmem:[%s1206_s7] ss:$0 sm:$0xff] }
 0x103   :  { %v518_v35 = vadd.f32 %v510_v3, %v412_v32  ;;  %v517_v36 = vadd.f32 %v509_v18, %v411_v33  ;;  %v540_v39 = vsel %vm524_vm9, %v516_v13, %v532_v34  ;;  %v674_v3 = vpack.c.bf16 %v1109_v46, %v1109_v46  ;;  %v658_v33 = vld [vmem:[#allocation3] sm:$0xff] }
 0x104   :  { %v554_v37 = vmul.f32 %v1123_v9, %v540_v39  ;;  %vm926_vm9 = vmmov 0   ;;  %v765_v13 = vsel %vm87_vm6, 1.0, %v922_v1 }
 0x105   :  { %vm526_vm11 = vcmp.gt.f32.partialorder %v518_v35, 0.0  ;;  %v534_v31 = vmul.f32 0.2, %v518_v35  ;;  %vm525_vm12 = vcmp.gt.f32.partialorder %v517_v36, 0.0  ;;  %v533_v41 = vmul.f32 0.2, %v517_v36  ;;  %777 = vmatprep.mubr.msk.bf16.mxu0 %vm926_vm9, %v922_v1 }
 0x106   :  { %567 = vadd.xlane.f32.xlu0 %v554_v37  ;;  %v680_v24 = vsel %vm678_vm8, %v674_v3, 0 }
 0x107   :  { %v542_v38 = vsel %vm526_vm11, %v518_v35, %v534_v31  ;;  %v541_v42 = vsel %vm525_vm12, %v517_v36, %v533_v41  ;;  %776 = vmatpush3.bf16.msra.mxu0 %v680_v24 }
 0x108   :  { %v556_v44 = vmul.f32 %v1123_v9, %v542_v38  ;;  %v555_v45 = vmul.f32 %v1123_v9, %v541_v42 }
 0x10a   :  { %571 = vadd.xlane.f32.xlu0 %v556_v44  ;;  %569 = vadd.xlane.f32.xlu1 %v555_v45 }
 0x10e   :  { %579 = vadd.xlane.f32.xlu1 %v578_v49 }
 0x17b   :  { %v560_v54 = vpop.xlane.xlu1 %559 }
 0x17c   :  { %v558_v50 = vpop.xlane.xlu0 %557  ;;  %v598_v56 = vrot.slane %v560_v54, %v593_v48 }
 0x17d   :  { %v594_v57 = vrot.slane %v558_v50, %v593_v48 }
 0x17f   :  { %v624_v61 = vsel %vm623_vm14, %v598_v56, %v594_v57 }
 0x183   :  { %v562_v15 = vpop.xlane.xlu0 %561 }
 0x184   :  { %v602_v9 = vrot.slane %v562_v15, %v593_v48 }
 0x186   :  { %v626_v63 = vsel %vm625_vm15, %v602_v9, %v624_v61 }
 0x18b   :  { %v564_v55 = vpop.xlane.xlu0 %563 }
 0x18c   :  { %v606_v17 = vrot.slane %v564_v55, %v593_v48 }
 0x18e   :  { %v628_v0 = vsel %vm627_vm0, %v606_v17, %v626_v63 }
 0x18f   :  { %v566_v58 = vpop.xlane.xlu1 %565 }
 0x190   :  { %v610_v60 = vrot.slane %v566_v58, %v593_v48 }
 0x192   :  { %v630_v51 = vsel %vm629_vm1, %v610_v60, %v628_v0 }
 0x193   :  { %v568_v59 = vpop.xlane.xlu0 %567 }
 0x194   :  { %v614_v62 = vrot.slane %v568_v59, %v593_v48 }
 0x196   :  { %v632_v7 = vsel %vm631_vm2, %v614_v62, %v630_v51 }
 0x197   :  { %v570_v2 = vpop.xlane.xlu1 %569  ;;  %v572_v47 = vpop.xlane.xlu0 %571 }
 0x198   :  { %v618_v5 = vrot.slane %v570_v2, %v593_v48  ;;  %v622_v6 = vrot.slane %v572_v47, %v593_v48 }
 0x19a   :  { %v634_v10 = vsel %vm633_vm3, %v618_v5, %v632_v7 }
 0x19b   :  { %v580_v11 = vpop.xlane.xlu1 %579  ;;  %v636_v14 = vsel %vm635_vm4, %v622_v6, %v634_v10 }
 0x19c   :  { %v638_v16 = vsel %vm88_vm5, %v580_v11, %v636_v14 }
 0x19d   :  { %v639_v19 = vsel %vm87_vm6, %v638_v16, -1e+30 }
 0x19e   :  { %v642_v20 = vsel %vm641_vm7, %v639_v19, -inf }
 0x19f   :  { %643 = vmax.xlane.f32.xlu0 %v642_v20 }
 0x22c   :  { %v644_v22 = vpop.xlane.xlu0 %643 }
 0x22d   :  { %v645_v23 = vmax.f32 %v640_v21, %v644_v22 }
 0x22f   :  { %v646_v12 = vsub.f32 %v640_v21, %v645_v23  ;;  %724 = vst.msk [vmem:[#allocation2] sm:$0xff] %vm82_vm13, %v645_v23  ;;  %651 = vperm.xlu1 %791, %v645_v23  }
 0x231   :  { %v647_v46 = vmul.f32 1.442695, %v646_v12 }
 0x2ae   :  { %v652_v18 = vpop.permute.xlu1 %651 }
 0x2af   :  { %v654_v25 = vsub.f32 %v639_v19, %v652_v18 }
 0x2b1   :  { %v655_v26 = vmul.f32 1.442695, %v654_v25 }
 0x2b3   :  { %794 = vpow2.f32 %v655_v26 }
 0x2b4   :  { %796 = vpow2.f32 %v647_v46 }
 0x2bd   :  { %v795_v27 = vpop.eup %794 }
 0x2be   :  { %v657_v28 = vmul.f32 %v795_v27, %v765_v13  ;;  %v797_v32 = vpop.eup %796 }
 0x2bf   :  { %v659_v34 = vmul.f32 %v797_v32, %v658_v33 }
 0x2c0   :  { %v660_v29 = vsel %vm641_vm7, %v657_v28, 0.0  ;;  %v673_v30 = vpack.c.bf16 %v657_v28, %v657_v28 }
 0x2c1   :  { %661 = vadd.xlane.f32.xlu0 %v660_v29 }
 0x2c2   :  { %778 = vmatmul.mubr.msk.bf16.vlgmr.msra.gmra.mrb[0].mxu0 %vm641_vm7, %v673_v30 }
 0x2d7   :  { %669 = vperm.xlu0 %792, %v797_v32  }
 0x34e   :  { %v662_v35 = vpop.xlane.xlu0 %661 }
 0x34f   :  { %v663_v36 = vadd.f32 %v662_v35, %v659_v34 }
 0x351   :  { %665 = vst.msk [vmem:[#allocation3] sm:$0xff] %vm82_vm13, %v663_v36 }
 0x356   :  { %v670_v41 = vpop.permute.xlu0 %669 }
 0x357   :  { %v672_v38 = vmul.f32 0.0, %v670_v41 }
 0x358   :  { %v729_v4 = vld [vmem:[#allocation3] sm:$0xff] }
 0x359   :  { %798 = vrcp.f32 %v729_v4 }
 0x363   :  { %v799_v1 = vpop.eup %798 }
 0x364   :  { %734 = vperm.xlu1 %791, %v799_v1  }
 0x395   :  { %v716_v39 = vpop.f32.mrb[0].mxu0 }
 0x396   :  { %v779_v40 = vpop.f32.mrb[1].mxu0  ;;  %v722_v42 = vadd.f32 %v716_v39, %v672_v38 }
 0x397   :  { %v719_v37 = vpop.f32.mrb[2].mxu0 }
 0x398   :  { %v780_v31 = vpop.f32.mrb[3].mxu0 }
 0x3e3   :  { %v735_v44 = vpop.permute.xlu1 %734 }
 0x3e4   :  { %v737_v45 = vmul.f32 %v735_v44, %v722_v42 }
 0x3e6   :  { %v746_v49 = vadd.f32 %v772_v43, %v737_v45 }
 0x3e8   :  { %747 = vst [vmem:[#allocation13] sm:$0xff] %v746_v49 }
 0x3e9   :  { %899 = shalt.err (!%p896_p8)
}
 0x3ea   :  { %s900_s15 = scalar_lea.hbm %s1207_s8, 128 }
 0x3eb   :  { %p901_p9 = scmp.ne.s32.totalorder %s1207_s8, %s900_s15  ;;  %p904_p10 = scmp.lt.u32.totalorder %s900_s15, %s1207_s8 }
 0x3ed   :  { %p906_p11 = pnand %p904_p10, %p901_p9 }
 0x3ef   :  { %909 = shalt.err (!%p906_p11)
}
 0x3f0   :  { %757 = dma.vmem_to_hbm [thread:$0]  %s755_s11, 128, %s1207_s8, [#allocation7]  }
 0x3f1   :  { %916 = dma.done.wait [#allocation7], 128  }
 0x3f2   :  { %917 = vsyncadd [#allocation7], 4294967168 }
 0x3f3   :  { %761 = vsyncpa [#allocation6], 1 }
 0x3f4   :  { %762 = vsyncpa [#allocation9], 1 }
 0x3f5   :  { %763 = vsyncpa [#allocation12], 1 }
 0x3f6   :  { %764 = vsyncpa [#allocation7], 1 }

</bundles_post_ra>
